<compile_context>
chip_gen: v7x
topology: tpu7x:2x2x1
jax: 0.10.0
libtpu: 0.0.40
codegen_flags: <defaults>
</compile_context>

<pallas_src>
import jax
import jax.numpy as jnp
from jax.experimental import pallas as pl
from jax.experimental.pallas import tpu as pltpu

INPUT_DIM = 2
SQRT2 = 2.0 ** 0.5
INV_SQRT2 = 1.0 / SQRT2
CLAMP_MIN = 0.58
CLAMP_MAX = 1.19
EPS = 1e-9


def _ceil_to(v, m):
    return ((v + m - 1) // m) * m


def _soc_kernel(angle_ref, x_ref, o_ref):
    x = x_ref[...]
    ndim = x.ndim
    L = x.shape[-1]

    # Scalar (SMEM) work: clamp like the PyTorch module does, and hoist the
    # reciprocal of the denominator so the vector path is multiply-only
    # (no per-element divisions through the single EUP slot except 1/y_norm).
    angle_tan = jnp.clip(angle_ref[0], CLAMP_MIN, CLAMP_MAX)
    inv_denom = 1.0 / (angle_tan * angle_tan + 1.0)

    # Lane-parity mask: even lanes hold the first element of each 2-dim group.
    lane = jax.lax.broadcasted_iota(jnp.int32, x.shape, ndim - 1)
    is_even = (lane & 1) == 0

    # Partner element of each pair via XLU rotations (free under an HBM-bound
    # kernel).  roll(x, L-1) == roll(x, -1): lane j sees x[j+1]; roll(x, 1):
    # lane j sees x[j-1].  Wrapped lanes are never selected.
    nxt = pltpu.roll(x, L - 1, axis=ndim - 1)
    prv = pltpu.roll(x, 1, axis=ndim - 1)
    partner = jnp.where(is_even, nxt, prv)

    pair_sum = x + partner              # a + b (identical on both lanes of a pair)
    s = INV_SQRT2 * pair_sum            # per-pair s
    y = x - 0.5 * pair_sum              # = +/-(a - b)/2, i.e. y at this lane
    y_norm = SQRT2 * jnp.abs(y)         # = |a - b| / sqrt(2) == ||y||_2 of the pair

    s_tan = s * angle_tan
    # s / angle_tan > -y_norm  <=>  s > -y_norm * angle_tan  (angle_tan > 0)
    mask1 = jnp.logical_and(s > -y_norm * angle_tan, s_tan < y_norm)
    mask2 = y_norm <= s_tan

    s1 = (s + y_norm * angle_tan) * inv_denom
    coeff = s1 * angle_tan / (y_norm + EPS)
    x_proj = s1 * INV_SQRT2 + coeff * y

    # mask1 and mask2 are mutually exclusive -> single nested select.
    res = jnp.where(mask1, x_proj, jnp.where(mask2, x, 0.0))
    o_ref[...] = res.astype(o_ref.dtype)


def soc_2dim_resnet_forward(x, angle_tan_param):
    """x: (B, C, H, W) float32.  angle_tan_param: (1,) float32 parameter."""
    B, C, H, W = x.shape
    if W % INPUT_DIM != 0:
        raise ValueError("last dimension must be divisible by 2 (2-dim SOC groups)")
    N = B * C * H * W

    # Lane-dense 2-D view (R, L): L even keeps every pair inside one row and
    # makes lane parity == global element parity; L a multiple of 128 keeps
    # loads/stores unmasked.  Prefer R >= 8 for sublane utilization.
    R = L = None
    for cand in (1024, 512, 256, 128):
        if N % cand == 0 and (N // cand) >= 8:
            R, L = N // cand, cand
            break
    if L is None:
        for cand in (1024, 512, 256, 128):
            if N % cand == 0:
                R, L = N // cand, cand
                break
    if L is None:
        R, L = B * C * H, W  # fallback: W is even; last block dim = full dim

    x2 = x.reshape(R, L).astype(jnp.float32)

    # Row tile: multiple of 8 sublanes, ~2 MiB per block so the double-buffered
    # input + output (+ temporaries) stay well inside the 32 MiB scoped VMEM we
    # request — safe on v5e / v6e / v7x.
    budget_rows = max(8, ((2 * 1024 * 1024) // (L * 4)) // 8 * 8)
    tr = min(_ceil_to(R, 8), budget_rows, 4096)
    R_pad = _ceil_to(R, tr)
    if R_pad != R:
        x2 = jnp.pad(x2, ((0, R_pad - R), (0, 0)))

    out2 = pl.pallas_call(
        _soc_kernel,
        out_shape=jax.ShapeDtypeStruct((R_pad, L), jnp.float32),
        grid=(R_pad // tr,),
        in_specs=[
            pl.BlockSpec(memory_space=pltpu.SMEM),        # angle_tan parameter
            pl.BlockSpec((tr, L), lambda i: (i, 0)),      # x row tile
        ],
        out_specs=pl.BlockSpec((tr, L), lambda i: (i, 0)),
        compiler_params=pltpu.CompilerParams(
            dimension_semantics=("parallel",),
            vmem_limit_bytes=32 * 1024 * 1024,
        ),
    )(angle_tan_param.astype(jnp.float32), x2)

    if R_pad != R:
        out2 = out2[:R]
    return out2.reshape(B, C, H, W).astype(x.dtype)


def _reference(x, angle_tan_param):
    """Plain-JAX mirror of the PyTorch forward (sanity check)."""
    B, C, H, W = x.shape
    xr = x.reshape(B, C, H, W // INPUT_DIM, INPUT_DIM)
    s = INV_SQRT2 * jnp.sum(xr, axis=4)
    y = xr - s[..., None] * INV_SQRT2
    # TODO(synk): the in-place nn.Parameter clamp (self.angle_tan.data = clamp(...))
    # is a stateful side effect; here the clamp is applied functionally only.
    angle_tan = jnp.clip(angle_tan_param, CLAMP_MIN, CLAMP_MAX)[0]
    y_norm = jnp.linalg.norm(y, ord=2, axis=4)
    mask1 = jnp.logical_and(s / angle_tan > -y_norm, s * angle_tan < y_norm)[..., None]
    mask2 = (y_norm <= s * angle_tan)[..., None]
    s1 = (s + y_norm * angle_tan) / (angle_tan ** 2 + 1.0)
    coeff = s1 / (y_norm + EPS) * angle_tan
    y1 = coeff[..., None] * y
    x_result = s1[..., None] * INV_SQRT2 + y1
    x_result2 = mask1 * x_result + mask2 * xr
    return x_result2.reshape(B, C, H, W)


if __name__ == "__main__":
    # nn.Parameter(torch.ones(1) * angle_tan) with angle_tan = 1.0
    angle_tan_param = jnp.ones((1,), dtype=jnp.float32)

    key = jax.random.PRNGKey(0)
    B, C, H, W = 2, 4, 16, 16
    x = jax.random.normal(key, (B, C, H, W), dtype=jnp.float32)

    out = soc_2dim_resnet_forward(x, angle_tan_param)
    out = jax.block_until_ready(out)

    ref = _reference(x, angle_tan_param)
    assert out.shape == (B, C, H, W)
    assert jnp.allclose(out, ref, atol=1e-5, rtol=1e-5)

    print("KERNEL_OK")
</pallas_src>

<mosaic_0001>
module attributes {stable_mosaic.version = 11 : i64} {
  func.func @_soc_kernel(%arg0: i32, %arg1: memref<1xf32, #tpu.memory_space<smem>>, %arg2: memref<8x256xf32, #tpu.memory_space<vmem>>, %arg3: memref<8x256xf32, #tpu.memory_space<vmem>>) attributes {dimension_semantics = [#tpu.dimension_semantics<parallel>], iteration_bounds = array<i64: 1>, scalar_prefetch = 0 : i64, scratch_operands = 0 : i64, tpu.core_type = #tpu.core_type<tc>, window_params = [{transform_indices = @transform_0, window_bounds = array<i64: 1>}, {transform_indices = @transform_1, window_bounds = array<i64: 8, 256>}, {transform_indices = @transform_2, window_bounds = array<i64: 8, 256>}]} {
    %c0 = arith.constant 0 : index
    %c0_0 = arith.constant 0 : index
    %0 = vector.load %arg2[%c0, %c0_0] : memref<8x256xf32, #tpu.memory_space<vmem>>, vector<8x256xf32>
    %c0_1 = arith.constant 0 : index
    %1 = memref.load %arg1[%c0_1] : memref<1xf32, #tpu.memory_space<smem>>
    %cst = arith.constant 5.800000e-01 : f32
    %cst_2 = arith.constant 1.190000e+00 : f32
    %2 = arith.maximumf %cst, %1 : f32
    %3 = arith.minimumf %cst_2, %2 : f32
    %4 = arith.mulf %3, %3 : f32
    %cst_3 = arith.constant 1.000000e+00 : f32
    %5 = arith.addf %4, %cst_3 : f32
    %cst_4 = arith.constant 1.000000e+00 : f32
    %6 = arith.divf %cst_4, %5 : f32
    %7 = tpu.iota {dimensions = array<i32: 1>} : vector<8x256xi32>
    %c1_i32 = arith.constant 1 : i32
    %8 = vector.broadcast %c1_i32 : i32 to vector<8x256xi32>
    %9 = arith.andi %7, %8 : vector<8x256xi32>
    %c0_i32 = arith.constant 0 : i32
    %10 = vector.broadcast %c0_i32 : i32 to vector<8x256xi32>
    %11 = arith.cmpi eq, %9, %10 : vector<8x256xi32>
    %c255_i32 = arith.constant 255 : i32
    %12 = tpu.dynamic_rotate %0 by %c255_i32 dim 1 : vector<8x256xf32>, i32 -> vector<8x256xf32>
    %c1_i32_5 = arith.constant 1 : i32
    %13 = tpu.dynamic_rotate %0 by %c1_i32_5 dim 1 : vector<8x256xf32>, i32 -> vector<8x256xf32>
    %14 = arith.select %11, %12, %13 : vector<8x256xi1>, vector<8x256xf32>
    %15 = arith.addf %0, %14 : vector<8x256xf32>
    %cst_6 = arith.constant 0.707106769 : f32
    %16 = vector.broadcast %cst_6 : f32 to vector<8x256xf32>
    %17 = arith.mulf %16, %15 : vector<8x256xf32>
    %cst_7 = arith.constant 5.000000e-01 : f32
    %18 = vector.broadcast %cst_7 : f32 to vector<8x256xf32>
    %19 = arith.mulf %18, %15 : vector<8x256xf32>
    %20 = arith.subf %0, %19 : vector<8x256xf32>
    %21 = math.absf %20 : vector<8x256xf32>
    %cst_8 = arith.constant 1.41421354 : f32
    %22 = vector.broadcast %cst_8 : f32 to vector<8x256xf32>
    %23 = arith.mulf %22, %21 : vector<8x256xf32>
    %24 = vector.broadcast %3 : f32 to vector<8x256xf32>
    %25 = arith.mulf %17, %24 : vector<8x256xf32>
    %cst_9 = arith.constant 0.000000e+00 : f32
    %26 = vector.broadcast %cst_9 : f32 to vector<8x256xf32>
    %27 = arith.subf %26, %23 : vector<8x256xf32>
    %28 = vector.broadcast %3 : f32 to vector<8x256xf32>
    %29 = arith.mulf %27, %28 : vector<8x256xf32>
    %30 = arith.cmpf ogt, %17, %29 : vector<8x256xf32>
    %31 = arith.cmpf olt, %25, %23 : vector<8x256xf32>
    %32 = arith.andi %30, %31 : vector<8x256xi1>
    %33 = arith.cmpf ole, %23, %25 : vector<8x256xf32>
    %34 = vector.broadcast %3 : f32 to vector<8x256xf32>
    %35 = arith.mulf %23, %34 : vector<8x256xf32>
    %36 = arith.addf %17, %35 : vector<8x256xf32>
    %37 = vector.broadcast %6 : f32 to vector<8x256xf32>
    %38 = arith.mulf %36, %37 : vector<8x256xf32>
    %39 = vector.broadcast %3 : f32 to vector<8x256xf32>
    %40 = arith.mulf %38, %39 : vector<8x256xf32>
    %cst_10 = arith.constant 9.99999971E-10 : f32
    %41 = vector.broadcast %cst_10 : f32 to vector<8x256xf32>
    %42 = arith.addf %23, %41 : vector<8x256xf32>
    %43 = arith.divf %40, %42 : vector<8x256xf32>
    %cst_11 = arith.constant 0.707106769 : f32
    %44 = vector.broadcast %cst_11 : f32 to vector<8x256xf32>
    %45 = arith.mulf %38, %44 : vector<8x256xf32>
    %46 = arith.mulf %43, %20 : vector<8x256xf32>
    %47 = arith.addf %45, %46 : vector<8x256xf32>
    %cst_12 = arith.constant 0.000000e+00 : f32
    %48 = vector.broadcast %cst_12 : f32 to vector<8x256xf32>
    %49 = arith.select %33, %0, %48 : vector<8x256xi1>, vector<8x256xf32>
    %50 = arith.select %32, %47, %49 : vector<8x256xi1>, vector<8x256xf32>
    %c0_13 = arith.constant 0 : index
    %c0_14 = arith.constant 0 : index
    %51 = vector.load %arg3[%c0_13, %c0_14] : memref<8x256xf32, #tpu.memory_space<vmem>>, vector<8x256xf32>
    tpu.vector_store %arg3[%c0_13, %c0_14], %50 {strides = array<i32>} : memref<8x256xf32, #tpu.memory_space<vmem>>, vector<8x256xf32>,
    return
  }
  func.func @transform_0(%arg0: i32) -> i32 {
    %c0_i32 = arith.constant 0 : i32
    %c0_i32_0 = arith.constant 0 : i32
    return %c0_i32 : i32
  }
  func.func @transform_1(%arg0: i32) -> (i32, i32) {
    %c0_i32 = arith.constant 0 : i32
    %c0_i32_0 = arith.constant 0 : i32
    return %arg0, %c0_i32 : i32, i32
  }
  func.func @transform_2(%arg0: i32) -> (i32, i32) {
    %c0_i32 = arith.constant 0 : i32
    %c0_i32_0 = arith.constant 0 : i32
    return %arg0, %c0_i32 : i32, i32
  }
}

</mosaic_0001>

<bundles_post_ra>
// kernel: tpu_custom_call.1
= control target key start
LH: loop header
LB: loop body
LE: loop exit
PB: predicated region body
PF: predicated region fallthrough
CT: control target
= control target key end

     0   :  { %8 = vsyncpa [#allocation4], 0  ;;  %s256_s0 = inlined_call_operand.<no memory space> [shape: f32[1], index: 0, kind: input, shape index: {}]   ;;  %s257_s1 = inlined_call_operand.hbm [shape: f32[8,256], index: 1, kind: input, shape index: {}]   ;;  %s258_s2 = inlined_call_operand.hbm [shape: f32[8,256], index: 2, kind: output, shape index: {}]  }
   0x1   :  { %9 = vsyncpa [#allocation5], 0  ;;  %s189_s9 = smov [#allocation3]   ;;  %s141_s13 = scalar_lea.hbm %s257_s1, 256 }
   0x2   :  { %s18_s10 = sshll.u32 %s189_s9, 4  ;;  %p142_p0 = scmp.ne.s32.totalorder %s257_s1, %s141_s13  ;;  %s19_s10 = int_to_ptr.vmem [resolvable:$true] %s18_s10 }
   0x3   :  { %p145_p1 = scmp.lt.u32.totalorder %s141_s13, %s257_s1 }
   0x5   :  { %p147_p2 = pnand %p145_p1, %p142_p0 }
   0x7   :  { %150 = shalt.err (!%p147_p2)
}
   0x8   :  { %s151_s18 = scalar_lea.vmem %s19_s10, 256  ;;  %p156_p4 = scmp.lt.s32.totalorder %s19_s10, %s19_s10 }
   0x9   :  { %p152_p3 = scmp.ne.s32.totalorder %s19_s10, %s151_s18  ;;  %p157_p5 = scmp.lt.s32.totalorder %s151_s18, %s151_s18 }
   0xb   :  { %p158_p6 = por %p157_p5, %p156_p4 }
   0xd   :  { %p159_p7 = pnand %p158_p6, %p152_p3 }
   0xf   :  { %162 = shalt.err (!%p159_p7)
}
  0x10   :  { %21 = dma.hbm_to_vmem [thread:$0]  %s257_s1, 256, %s19_s10, [#allocation4]  }
  0x11   :  { %185 = dma.done.wait [#allocation4], 256  }
  0x12   :  { %186 = vsyncadd [#allocation4], 4294967040  ;;  %s190_s21 = smov 0.58   ;;  %s191_s25 = smov 1.19   ;;  %v35_v4 = vlaneseq }
  0x13   :  { %s28_s24 = smax.f32 %s190_s21, %s256_s0  ;;  %v229_v0 = vld [vmem:[#allocation3] sm:$0xff]  ;;  %s192_s29 = smov 1   ;;  %v233_v2 = vld [vmem:[#allocation3 + $0x8] sm:$0xff] }
  0x14   :  { %s225_s26 = smin.f32 %s191_s25, %s28_s24  ;;  %49 = vrot.lane.b32.xlu1 %v229_v0, %s192_s29  ;;  %s193_s1 = smov 127   ;;  %v36_v5 = vand.u32 127, %v35_v4 }
  0x15   :  { %s30_s27 = smul.f32 %s225_s26, %s225_s26  ;;  %42 = vrot.lane.b32.xlu0 %v229_v0, %s193_s1  ;;  %v70_v29 = vstv %s225_s26  ;;  %s194_s30 = smov [#allocation6]  }
  0x16   :  { %v37_v6 = vadd.s32 128, %v36_v5  ;;  %v38_v7 = vand.u32 1, %v36_v5  ;;  %vm53_vm0 = vcmp.lt.s32.totalorder %v36_v5, 1  ;;  %vm46_vm1 = vcmp.lt.s32.totalorder %v36_v5, 127  ;;  %s118_s3 = sshll.u32 %s194_s30, 4  ;;  %s119_s3 = int_to_ptr.vmem [resolvable:$true] %s118_s3 }
  0x17   :  { %s31_s28 = sadd.f32 1.0, %s30_s27  ;;  %s163_s4 = scalar_lea.vmem %s119_s3, 256 }
  0x18   :  { %51 = vrot.lane.b32.xlu1 %v233_v2, %s192_s29  ;;  %v39_v8 = vand.u32 1, %v37_v6  ;;  %vm40_vm2 = vcmp.eq.s32.totalorder %v38_v7, 0  ;;  %p164_p8 = scmp.ne.s32.totalorder %s119_s3, %s163_s4  ;;  %p168_p9 = scmp.lt.s32.totalorder %s119_s3, %s119_s3 }
  0x19   :  { %v32_v1 = vstv %s31_s28  ;;  %44 = vrot.lane.b32.xlu0 %v233_v2, %s193_s1  ;;  %p169_p10 = scmp.lt.s32.totalorder %s163_s4, %s163_s4 }
  0x1a   :  { %135 = vrcp.f32 %v32_v1  ;;  %vm41_vm3 = vcmp.eq.s32.totalorder %v39_v8, 0 }
  0x1b   :  { %p170_p11 = por %p169_p10, %p168_p9 }
  0x1d   :  { %p171_p12 = pnand %p170_p11, %p164_p8 }
  0x24   :  { %v136_v3 = vpop.eup %135 }
  0x25   :  { %127 = vpush %v136_v3 }
  0x56   :  { %s128_s0 = spop %127 }
  0x57   :  { %v89_v38 = vstv %s128_s0 }
  0x86   :  { %v50_v9 = vpop.permute.xlu1 %49 }
  0x87   :  { %v43_v10 = vpop.permute.xlu0 %42 }
  0x8a   :  { %v52_v11 = vpop.permute.xlu1 %51 }
  0x8b   :  { %v45_v12 = vpop.permute.xlu0 %44  ;;  %v54_v13 = vsel %vm53_vm0, %v50_v9, %v52_v11  ;;  %v55_v14 = vsel %vm53_vm0, %v52_v11, %v50_v9 }
  0x8c   :  { %v47_v15 = vsel %vm46_vm1, %v43_v10, %v45_v12  ;;  %v48_v16 = vsel %vm46_vm1, %v45_v12, %v43_v10 }
  0x8d   :  { %v56_v17 = vsel %vm40_vm2, %v47_v15, %v55_v14  ;;  %v57_v18 = vsel %vm41_vm3, %v48_v16, %v54_v13 }
  0x8e   :  { %v58_v19 = vadd.f32 %v56_v17, %v229_v0  ;;  %v59_v20 = vadd.f32 %v57_v18, %v233_v2 }
  0x90   :  { %v62_v21 = vmul.f32 0.5, %v58_v19  ;;  %v63_v22 = vmul.f32 0.5, %v59_v20  ;;  %v60_v34 = vmul.f32 0.70710677, %v58_v19  ;;  %v61_v35 = vmul.f32 0.70710677, %v59_v20 }
  0x92   :  { %v64_v23 = vsub.f32 %v229_v0, %v62_v21  ;;  %v65_v24 = vsub.f32 %v233_v2, %v63_v22  ;;  %v71_v50 = vmul.f32 %v70_v29, %v60_v34  ;;  %v72_v52 = vmul.f32 %v70_v29, %v61_v35 }
  0x94   :  { %v66_v25 = vand.u32 2147483647, %v64_v23  ;;  %v67_v26 = vand.u32 2147483647, %v65_v24 }
  0x96   :  { %v68_v27 = vmul.f32 1.4142135, %v66_v25  ;;  %v69_v28 = vmul.f32 1.4142135, %v67_v26 }
  0x98   :  { %v85_v30 = vmul.f32 %v70_v29, %v68_v27  ;;  %v86_v31 = vmul.f32 %v70_v29, %v69_v28  ;;  %v94_v32 = vadd.f32 1e-09, %v68_v27  ;;  %v95_v33 = vadd.f32 1e-09, %v69_v28 }
  0x99   :  { %v73_v40 = vsub.f32 0.0, %v68_v27  ;;  %v74_v42 = vsub.f32 0.0, %v69_v28  ;;  %vm83_vm5 = vcmp.le.f32.partialorder %v68_v27, %v71_v50  ;;  %vm84_vm7 = vcmp.le.f32.partialorder %v69_v28, %v72_v52 }
  0x9a   :  { %137 = vrcp.f32 %v94_v32  ;;  %v87_v36 = vadd.f32 %v85_v30, %v60_v34  ;;  %v88_v37 = vadd.f32 %v86_v31, %v61_v35  ;;  %vm79_vm8 = vcmp.lt.f32.partialorder %v71_v50, %v68_v27 }
  0x9b   :  { %139 = vrcp.f32 %v95_v33  ;;  %v75_v44 = vmul.f32 %v73_v40, %v70_v29  ;;  %v76_v47 = vmul.f32 %v74_v42, %v70_v29  ;;  %vm80_vm9 = vcmp.lt.f32.partialorder %v72_v52, %v69_v28 }
  0x9c   :  { %v90_v39 = vmul.f32 %v89_v38, %v87_v36  ;;  %v91_v41 = vmul.f32 %v89_v38, %v88_v37  ;;  %v106_v59 = vsel %vm83_vm5, %v229_v0, 0.0  ;;  %v107_v60 = vsel %vm84_vm7, %v233_v2, 0.0 }
  0x9d   :  { %vm77_vm4 = vcmp.gt.f32.partialorder %v60_v34, %v75_v44  ;;  %vm78_vm6 = vcmp.gt.f32.partialorder %v61_v35, %v76_v47 }
  0x9e   :  { %v92_v43 = vmul.f32 %v90_v39, %v70_v29  ;;  %v93_v46 = vmul.f32 %v91_v41, %v70_v29  ;;  %v100_v53 = vmul.f32 0.70710677, %v90_v39  ;;  %v101_v55 = vmul.f32 0.70710677, %v91_v41  ;;  %vm81_vm10 = vmand %vm77_vm4, %vm79_vm8 }
  0x9f   :  { %vm82_vm11 = vmand %vm78_vm6, %vm80_vm9 }
  0xa4   :  { %v138_v45 = vpop.eup %137 }
  0xa5   :  { %v140_v48 = vpop.eup %139  ;;  %v97_v49 = vmul.f32 %v138_v45, %v92_v43 }
  0xa6   :  { %v99_v51 = vmul.f32 %v140_v48, %v93_v46 }
  0xa7   :  { %v102_v54 = vmul.f32 %v97_v49, %v64_v23 }
  0xa8   :  { %v103_v56 = vmul.f32 %v99_v51, %v65_v24 }
  0xa9   :  { %v104_v57 = vadd.f32 %v102_v54, %v100_v53 }
  0xaa   :  { %v105_v58 = vadd.f32 %v103_v56, %v101_v55 }
  0xab   :  { %v108_v61 = vsel %vm81_vm10, %v104_v57, %v106_v59 }
  0xac   :  { %v109_v62 = vsel %vm82_vm11, %v105_v58, %v107_v60  ;;  %110 = vst [vmem:[#allocation6] sm:$0xff] %v108_v61 }
  0xad   :  { %111 = vst [vmem:[#allocation6 + $0x8] sm:$0xff] %v109_v62 }
  0xae   :  { %174 = shalt.err (!%p171_p12)
}
  0xaf   :  { %s175_s7 = scalar_lea.hbm %s258_s2, 256 }
  0xb0   :  { %p176_p13 = scmp.ne.s32.totalorder %s258_s2, %s175_s7  ;;  %p179_p0 = scmp.lt.u32.totalorder %s175_s7, %s258_s2 }
  0xb2   :  { %p181_p1 = pnand %p179_p0, %p176_p13 }
  0xb4   :  { %184 = shalt.err (!%p181_p1)
}
  0xb5   :  { %121 = dma.vmem_to_hbm [thread:$0]  %s119_s3, 256, %s258_s2, [#allocation5]  }
  0xb6   :  { %187 = dma.done.wait [#allocation5], 256  }
  0xb7   :  { %188 = vsyncadd [#allocation5], 4294967040 }
  0xb8   :  { %125 = vsyncpa [#allocation4], 1 }
  0xb9   :  { %126 = vsyncpa [#allocation5], 1 }

</bundles_post_ra>
